<compile_context>
chip_gen: v7x
topology: tpu7x:2x2x1
jax: 0.10.0
libtpu: 0.0.40
codegen_flags: <defaults>
</compile_context>

<pallas_src>
import jax
import jax.numpy as jnp
import numpy as np
from jax.experimental import pallas as pl
from jax.experimental.pallas import tpu as pltpu

_IMG = 96                      # input images are (N, 1, 96, 96)  (fc1 = 32*12*12 = 4608)
_HP = 104                      # padded plane rows  (image rows at [4, 100))
_WL = 128                      # padded plane lanes (image lanes at [4, 100)) -- one lane tile
_PAD = 4
_BN_EPS = 1e-5
_MLP_TILE_K = 2304             # fc1 reduction tile (2 grid steps over K=4608)
_VMEM_CONV = 56 * 1024 * 1024  # fits v7x's 64 MiB physical VMEM with headroom
_VMEM_MLP = 40 * 1024 * 1024


# ----------------------------------------------------------------------------
# pltpu.roll convention probe (run once at import, outside any trace).
# We need  shifted[p] == x[p + delta];  the tiny probe pins down the sign so the
# conv taps cannot be silently mirrored.
# ----------------------------------------------------------------------------
def _roll_probe_kernel(x_ref, o_ref):
    o_ref[...] = pltpu.roll(x_ref[...], 1, 1)


def _probe_roll_convention():
    x = jnp.arange(8 * 128, dtype=jnp.float32).reshape(8, 128)
    y = pl.pallas_call(
        _roll_probe_kernel,
        out_shape=jax.ShapeDtypeStruct((8, 128), jnp.float32))(x)
    return bool(jnp.array_equal(y, jnp.roll(x, 1, axis=1)))


_ROLL_LIKE_JNP = _probe_roll_convention()


def _shift(x, delta):
    """out[..., p] = x[..., p + delta] along the flattened-plane (last) axis."""
    if delta == 0:
        return x
    L = x.shape[-1]
    shift = (-delta) % L if _ROLL_LIKE_JNP else delta % L
    return pltpu.roll(x, shift, x.ndim - 1)


def _pick_tile(total, target):
    """Largest multiple of 128 that divides `total` and is <= target; else `total`."""
    best, t = total, 128
    while t <= min(total, target):
        if total % t == 0:
            best = t
        t += 128
    return best


# ----------------------------------------------------------------------------
# In-kernel helpers for the fused conv stack
# ----------------------------------------------------------------------------
def _write_patches(a, s, p_ref):
    """Write the 9 dilated taps of a (Cin, L) plane into the (9*Cin, L) bf16 scratch."""
    c = a.shape[0]
    t = 0
    for dh in (-1, 0, 1):
        for dw in (-1, 0, 1):
            p_ref[t * c:(t + 1) * c, :] = _shift(a, (dh * _WL + dw) * s).astype(p_ref.dtype)
            t += 1


def _pool_relu_bn(y, b, g, be, mask, s, count):
    """bias -> 2x2 maxpool (window offsets {0,s}^2) -> relu -> batchnorm -> mask.

    y: (C, L) conv output on the plane; b/g/be: (C, 1); mask: (1, L) anchor mask of
    the pooled grid; count = number of valid (anchor) positions per channel.
    """
    y = y + b
    m = y
    for d in (s, s * _WL, s * (_WL + 1)):
        m = jnp.maximum(m, _shift(y, d))
    r = jnp.maximum(m, 0.0)
    rm = r * mask
    inv_n = 1.0 / float(count)
    mean = jnp.sum(rm, axis=-1, keepdims=True) * inv_n
    var = jnp.sum(((r - mean) * mask) ** 2, axis=-1, keepdims=True) * inv_n
    out = (r - mean) * jax.lax.rsqrt(var + _BN_EPS) * g + be
    return out * mask


def _make_conv_stack_kernel(nb):
    counts = (nb * 48 * 48, nb * 24 * 24, nb * 12 * 12)

    def kernel(x_ref, masks_ref,
               w1_ref, b1_ref, g1_ref, be1_ref,
               w2_ref, b2_ref, g2_ref, be2_ref,
               w3_ref, b3_ref, g3_ref, be3_ref,
               out_ref, p2_ref, p3_ref):
        masks = masks_ref[...]                       # (3, L) f32
        m1, m2, m3 = masks[0:1], masks[1:2], masks[2:3]
        x = x_ref[...]                               # (1, L) f32 zero-padded input plane

        # ---- block 1: conv 1->8 (VPU, dilation 1) -> pool -> relu -> bn ----
        w1 = w1_ref[...]                             # (8, 9) f32, taps ordered (kh, kw)
        y = None
        t = 0
        for dh in (-1, 0, 1):
            for dw in (-1, 0, 1):
                c = w1[:, t:t + 1] * _shift(x, dh * _WL + dw)
                y = c if y is None else y + c
                t += 1
        a1 = _pool_relu_bn(y, b1_ref[...], g1_ref[...], be1_ref[...], m1, 1, counts[0])

        # ---- block 2: conv 8->16 (MXU, dilation 2) -> pool -> relu -> bn ----
        _write_patches(a1, 2, p2_ref)                # (72, L) bf16 patches
        y = jnp.dot(w2_ref[...], p2_ref[...], preferred_element_type=jnp.float32)
        a2 = _pool_relu_bn(y, b2_ref[...], g2_ref[...], be2_ref[...], m2, 2, counts[1])

        # ---- block 3: conv 16->32 (MXU, dilation 4) -> pool -> relu -> bn ----
        _write_patches(a2, 4, p3_ref)                # (144, L) bf16 patches
        y = jnp.dot(w3_ref[...], p3_ref[...], preferred_element_type=jnp.float32)
        a3 = _pool_relu_bn(y, b3_ref[...], g3_ref[...], be3_ref[...], m3, 4, counts[2])

        out_ref[...] = a3.astype(out_ref.dtype)

    return kernel


# ----------------------------------------------------------------------------
# Pallas wrappers
# ----------------------------------------------------------------------------
def conv_stack(planes, masks, kp, nb):
    """planes: (B, 1, L) f32 padded image planes -> (B, 32, L) bf16 masked bn3 planes."""
    B = planes.shape[0]
    L = planes.shape[-1]
    small = lambda c: pl.BlockSpec((c, 1), lambda b: (0, 0))
    return pl.pallas_call(
        _make_conv_stack_kernel(nb),
        out_shape=jax.ShapeDtypeStruct((B, 32, L), jnp.bfloat16),
        grid=(B,),
        in_specs=[
            pl.BlockSpec((None, 1, L), lambda b: (b, 0, 0)),   # input plane (per branch)
            pl.BlockSpec((3, L), lambda b: (0, 0)),            # pool-anchor masks
            pl.BlockSpec((8, 9), lambda b: (0, 0)),            # conv1 weights (Cout, 9)
            small(8), small(8), small(8),                      # b1, gamma1, beta1
            pl.BlockSpec((16, 72), lambda b: (0, 0)),          # conv2 weights (Cout, 9*Cin)
            small(16), small(16), small(16),
            pl.BlockSpec((32, 144), lambda b: (0, 0)),         # conv3 weights
            small(32), small(32), small(32),
        ],
        out_specs=pl.BlockSpec((None, 32, L), lambda b: (b, 0, 0)),
        scratch_shapes=[pltpu.VMEM((72, L), jnp.bfloat16),     # conv2 patch matrix
                        pltpu.VMEM((144, L), jnp.bfloat16)],   # conv3 patch matrix
        compiler_params=pltpu.CompilerParams(
            dimension_semantics=("parallel",),
            vmem_limit_bytes=_VMEM_CONV),
    )(planes, masks,
      kp["w1"], kp["b1"], kp["g1"], kp["be1"],
      kp["w2"], kp["b2"], kp["g2"], kp["be2"],
      kp["w3"], kp["b3"], kp["g3"], kp["be3"])


def _mlp_kernel(x_ref, w1_ref, b1_ref, w2_ref, b2_ref, w3_ref, b3_ref, out_ref, acc_ref):
    """fc1 (K tiled on the grid) -> relu -> fc2 -> relu -> fc3.  bf16 in, f32 accum."""
    k = pl.program_id(0)

    @pl.when(k == 0)
    def _init():
        acc_ref[...] = jnp.zeros_like(acc_ref)

    acc_ref[...] += jnp.dot(x_ref[...], w1_ref[...], preferred_element_type=jnp.float32)

    @pl.when(k == pl.num_programs(0) - 1)
    def _finalize():
        h = jnp.maximum(acc_ref[...] + b1_ref[...], 0.0)
        h = jnp.dot(h.astype(w2_ref.dtype), w2_ref[...],
                    preferred_element_type=jnp.float32) + b2_ref[...]
        h = jnp.maximum(h, 0.0)
        out_ref[...] = jnp.dot(h.astype(w3_ref.dtype), w3_ref[...],
                               preferred_element_type=jnp.float32) + b3_ref[...]


def mlp_head(feat, kp):
    """feat: (Ntot, 4608) -> (Ntot, 8) f32.  fc1_w (pre-cast bf16) streamed over K."""
    Ntot, K1 = feat.shape
    H1 = kp["fc1_w"].shape[1]
    H2 = kp["fc2_w"].shape[1]
    D = kp["fc3_w"].shape[1]
    tk = _pick_tile(K1, _MLP_TILE_K)
    return pl.pallas_call(
        _mlp_kernel,
        out_shape=jax.ShapeDtypeStruct((Ntot, D), jnp.float32),
        grid=(K1 // tk,),
        in_specs=[
            pl.BlockSpec((Ntot, tk), lambda k: (0, k)),
            pl.BlockSpec((tk, H1), lambda k: (k, 0)),
            pl.BlockSpec((1, H1), lambda k: (0, 0)),
            pl.BlockSpec((H1, H2), lambda k: (0, 0)),
            pl.BlockSpec((1, H2), lambda k: (0, 0)),
            pl.BlockSpec((H2, D), lambda k: (0, 0)),
            pl.BlockSpec((1, D), lambda k: (0, 0)),
        ],
        out_specs=pl.BlockSpec((Ntot, D), lambda k: (0, 0)),
        scratch_shapes=[pltpu.VMEM((Ntot, H1), jnp.float32)],
        compiler_params=pltpu.CompilerParams(
            dimension_semantics=("arbitrary",),
            vmem_limit_bytes=_VMEM_MLP),
    )(feat.astype(jnp.bfloat16), kp["fc1_w"], kp["fc1_b"],
      kp["fc2_w"], kp["fc2_b"], kp["fc3_w"], kp["fc3_b"])


# ----------------------------------------------------------------------------
# Host-side glue (tiny, layout only)
# ----------------------------------------------------------------------------
def _build_masks(nb):
    """(3, nb*HP*WL) f32 masks marking the pool-1/2/3 anchor positions on the plane."""
    m = np.zeros((3, nb, _HP, _WL), np.float32)
    for k in range(3):
        s = 2 ** (k + 1)
        idx = _PAD + s * np.arange(_IMG // s)
        m[k][:, idx[:, None], idx[None, :]] = 1.0
    return m.reshape(3, nb * _HP * _WL)


def _forward_batched(x, kp, n_branches):
    """Fused forward over n_branches independent BatchNorm batches stacked along N."""
    Ntot, cin, H, W = x.shape
    assert cin == 1 and H == _IMG and W == _IMG and Ntot % n_branches == 0
    B = n_branches
    nb = Ntot // B
    L = nb * _HP * _WL

    # zero-padded per-image planes, flattened into the lane axis
    xr = x.reshape(B, nb, H, W)
    xp = jnp.pad(xr, ((0, 0), (0, 0), (_PAD, _HP - H - _PAD), (_PAD, _WL - W - _PAD)))
    planes = xp.reshape(B, 1, L)
    masks = jnp.asarray(_build_masks(nb))                    # trace-time constant

    p3 = conv_stack(planes, masks, kp, nb)                   # (B, 32, L) bf16
    p3 = p3.reshape(B, 32, nb, _HP, _WL)
    sub = p3[:, :, :, _PAD:_PAD + _IMG:8, _PAD:_PAD + _IMG:8]   # (B, 32, nb, 12, 12)
    feat = sub.transpose(0, 2, 1, 3, 4).reshape(Ntot, 32 * 12 * 12)  # PyTorch (C,H,W) order
    return mlp_head(feat, kp)                                # (Ntot, 8)


def forward_once(x, kparams):
    return _forward_batched(x, kparams, 1)


def siamese_forward(x1, x2, kparams):
    n = x1.shape[0]
    out = _forward_batched(jnp.concatenate([x1, x2], axis=0), kparams, 2)
    return out[:n], out[n:]


# ----------------------------------------------------------------------------
# Parameters
# ----------------------------------------------------------------------------
def init_params(key):
    ks = jax.random.split(key, 12)

    def nrm(k, shape, fan_in):
        return (jax.random.normal(k, shape, jnp.float32) / np.sqrt(fan_in)).astype(jnp.float32)

    return {
        "conv1_w": nrm(ks[0], (3, 3, 1, 8), 9.0),     "conv1_b": nrm(ks[1], (8,), 9.0),
        "conv2_w": nrm(ks[2], (3, 3, 8, 16), 72.0),   "conv2_b": nrm(ks[3], (16,), 72.0),
        "conv3_w": nrm(ks[4], (3, 3, 16, 32), 144.0), "conv3_b": nrm(ks[5], (32,), 144.0),
        "bn1_g": jnp.ones((8,), jnp.float32),  "bn1_b": jnp.zeros((8,), jnp.float32),
        "bn2_g": jnp.ones((16,), jnp.float32), "bn2_b": jnp.zeros((16,), jnp.float32),
        "bn3_g": jnp.ones((32,), jnp.float32), "bn3_b": jnp.zeros((32,), jnp.float32),
        "fc1_w": nrm(ks[6], (4608, 1024), 4608.0), "fc1_b": nrm(ks[7], (1024,), 4608.0),
        "fc2_w": nrm(ks[8], (1024, 512), 1024.0),  "fc2_b": nrm(ks[9], (512,), 1024.0),
        "fc3_w": nrm(ks[10], (512, 8), 512.0),     "fc3_b": nrm(ks[11], (8,), 512.0),
    }


def prepare_params(p):
    """One-time, outside-jit preprocessing: conv weights as (Cout, 9*Cin) matrices,
    fc/conv MXU weights pre-cast to bf16 so no per-call cast traffic remains."""
    def cmat(w):                      # HWIO (3,3,ci,co) -> (co, 9*ci), rows = (kh, kw, ci)
        co = w.shape[-1]
        return jnp.transpose(w, (3, 0, 1, 2)).reshape(co, -1)

    col = lambda v: v.reshape(-1, 1).astype(jnp.float32)
    row = lambda v: v.reshape(1, -1).astype(jnp.float32)
    return {
        "w1": cmat(p["conv1_w"]).astype(jnp.float32),
        "b1": col(p["conv1_b"]), "g1": col(p["bn1_g"]), "be1": col(p["bn1_b"]),
        "w2": cmat(p["conv2_w"]).astype(jnp.bfloat16),
        "b2": col(p["conv2_b"]), "g2": col(p["bn2_g"]), "be2": col(p["bn2_b"]),
        "w3": cmat(p["conv3_w"]).astype(jnp.bfloat16),
        "b3": col(p["conv3_b"]), "g3": col(p["bn3_g"]), "be3": col(p["bn3_b"]),
        "fc1_w": p["fc1_w"].astype(jnp.bfloat16), "fc1_b": row(p["fc1_b"]),
        "fc2_w": p["fc2_w"].astype(jnp.bfloat16), "fc2_b": row(p["fc2_b"]),
        "fc3_w": p["fc3_w"].astype(jnp.bfloat16), "fc3_b": row(p["fc3_b"]),
    }


# ----------------------------------------------------------------------------
# Pure-JAX reference (per-branch, exact PyTorch op order) for correctness check
# ----------------------------------------------------------------------------
def _ref_conv_block(x, w_hwio, b, g, be):
    cout = w_hwio.shape[-1]
    z = jax.lax.conv_general_dilated(
        x, w_hwio, window_strides=(1, 1), padding="SAME",
        dimension_numbers=("NCHW", "HWIO", "NCHW"), precision="highest")
    z = z + b.reshape(1, cout, 1, 1)
    z = jax.lax.reduce_window(z, -jnp.inf, jax.lax.max, (1, 1, 2, 2), (1, 1, 2, 2), "VALID")
    y = jnp.maximum(z, 0.0)
    mean = jnp.mean(y, axis=(0, 2, 3), keepdims=True)
    var = jnp.mean((y - mean) ** 2, axis=(0, 2, 3), keepdims=True)
    return ((y - mean) * jax.lax.rsqrt(var + _BN_EPS) * g.reshape(1, cout, 1, 1)
            + be.reshape(1, cout, 1, 1))


def ref_forward_once(x, p):
    h = _ref_conv_block(x, p["conv1_w"], p["conv1_b"], p["bn1_g"], p["bn1_b"])
    h = _ref_conv_block(h, p["conv2_w"], p["conv2_b"], p["bn2_g"], p["bn2_b"])
    h = _ref_conv_block(h, p["conv3_w"], p["conv3_b"], p["bn3_g"], p["bn3_b"])
    h = h.reshape(h.shape[0], -1)
    h = jnp.maximum(jnp.dot(h, p["fc1_w"], precision="highest") + p["fc1_b"], 0.0)
    h = jnp.maximum(jnp.dot(h, p["fc2_w"], precision="highest") + p["fc2_b"], 0.0)
    return jnp.dot(h, p["fc3_w"], precision="highest") + p["fc3_b"]


# ----------------------------------------------------------------------------
if __name__ == "__main__":
    key = jax.random.PRNGKey(0)
    kp_, k1, k2 = jax.random.split(key, 3)
    params = init_params(kp_)
    kparams = prepare_params(params)          # one-time bf16 pre-cast / repack (outside jit)

    # fc1 in_features = 4608 = 32 * 12 * 12  =>  input images are (N, 1, 96, 96)
    x1 = jax.random.normal(k1, (2, 1, 96, 96), dtype=jnp.float32)
    x2 = jax.random.normal(k2, (2, 1, 96, 96), dtype=jnp.float32)

    fwd = jax.jit(lambda a, b: siamese_forward(a, b, kparams))
    out1, out2 = fwd(x1, x2)
    jax.block_until_ready((out1, out2))

    assert out1.shape == (2, 8) and out2.shape == (2, 8)
    r1 = ref_forward_once(x1, params)
    r2 = ref_forward_once(x2, params)
    # bf16 MXU operands (conv2/3 + fc head) with f32 accumulation -> small mismatch vs f32 ref
    np.testing.assert_allclose(np.asarray(out1), np.asarray(r1), rtol=3e-2, atol=3e-2)
    np.testing.assert_allclose(np.asarray(out2), np.asarray(r2), rtol=3e-2, atol=3e-2)

    print("KERNEL_OK")
</pallas_src>

<mosaic_0001>
module attributes {stable_mosaic.version = 11 : i64} {
  func.func @_roll_probe_kernel(%arg0: memref<8x128xf32, #tpu.memory_space<vmem>>, %arg1: memref<8x128xf32, #tpu.memory_space<vmem>>) attributes {dimension_semantics = [], scalar_prefetch = 0 : i64, scratch_operands = 0 : i64, tpu.core_type = #tpu.core_type<tc>} {
    %c0 = arith.constant 0 : index
    %c0_0 = arith.constant 0 : index
    %0 = vector.load %arg0[%c0, %c0_0] : memref<8x128xf32, #tpu.memory_space<vmem>>, vector<8x128xf32>
    %c1_i32 = arith.constant 1 : i32
    %1 = tpu.dynamic_rotate %0 by %c1_i32 dim 1 : vector<8x128xf32>, i32 -> vector<8x128xf32>
    %c0_1 = arith.constant 0 : index
    %c0_2 = arith.constant 0 : index
    %2 = vector.load %arg1[%c0_1, %c0_2] : memref<8x128xf32, #tpu.memory_space<vmem>>, vector<8x128xf32>
    tpu.vector_store %arg1[%c0_1, %c0_2], %1 {strides = array<i32>} : memref<8x128xf32, #tpu.memory_space<vmem>>, vector<8x128xf32>,
    return
  }
}

</mosaic_0001>

<bundles_post_ra>
// kernel: tpu_custom_call.1
= control target key start
LH: loop header
LB: loop body
LE: loop exit
PB: predicated region body
PF: predicated region fallthrough
CT: control target
= control target key end

     0   :  { %6 = vsyncpa [#allocation3], 0  ;;  %s128_s0 = inlined_call_operand.hbm [shape: f32[8,128], index: 0, kind: input, shape index: {}]   ;;  %s129_s1 = inlined_call_operand.hbm [shape: f32[8,128], index: 1, kind: output, shape index: {}]  }
   0x1   :  { %7 = vsyncpa [#allocation4], 0  ;;  %s91_s6 = smov [#allocation2]   ;;  %s43_s10 = scalar_lea.hbm %s128_s0, 128 }
   0x2   :  { %s14_s7 = sshll.u32 %s91_s6, 4  ;;  %p44_p0 = scmp.ne.s32.totalorder %s128_s0, %s43_s10  ;;  %s15_s7 = int_to_ptr.vmem [resolvable:$true] %s14_s7 }
   0x3   :  { %p47_p1 = scmp.lt.u32.totalorder %s43_s10, %s128_s0 }
   0x5   :  { %p49_p2 = pnand %p47_p1, %p44_p0 }
   0x7   :  { %52 = shalt.err (!%p49_p2)
}
   0x8   :  { %s53_s15 = scalar_lea.vmem %s15_s7, 128  ;;  %p58_p4 = scmp.lt.s32.totalorder %s15_s7, %s15_s7 }
   0x9   :  { %p54_p3 = scmp.ne.s32.totalorder %s15_s7, %s53_s15  ;;  %p59_p5 = scmp.lt.s32.totalorder %s53_s15, %s53_s15 }
   0xb   :  { %p60_p6 = por %p59_p5, %p58_p4 }
   0xd   :  { %p61_p7 = pnand %p60_p6, %p54_p3 }
   0xf   :  { %64 = shalt.err (!%p61_p7)
}
  0x10   :  { %17 = dma.hbm_to_vmem [thread:$0]  %s128_s0, 128, %s15_s7, [#allocation3]  }
  0x11   :  { %87 = dma.done.wait [#allocation3], 128  }
  0x12   :  { %88 = vsyncadd [#allocation3], 4294967168  ;;  %v21_v0 = vld [vmem:[#allocation2] sm:$0xff]  ;;  %s92_s18 = smov 1   ;;  %s93_s19 = smov [#allocation5]  }
  0x13   :  { %22 = vrot.lane.b32.xlu0 %v21_v0, %s92_s18  ;;  %s31_s20 = sshll.u32 %s93_s19, 4  ;;  %s32_s20 = int_to_ptr.vmem [resolvable:$true] %s31_s20 }
  0x14   :  { %s65_s21 = scalar_lea.vmem %s32_s20, 128  ;;  %p70_p9 = scmp.lt.s32.totalorder %s32_s20, %s32_s20 }
  0x15   :  { %p66_p8 = scmp.ne.s32.totalorder %s32_s20, %s65_s21  ;;  %p71_p10 = scmp.lt.s32.totalorder %s65_s21, %s65_s21 }
  0x17   :  { %p72_p11 = por %p71_p10, %p70_p9 }
  0x19   :  { %p73_p12 = pnand %p72_p11, %p66_p8 }
  0x85   :  { %v23_v1 = vpop.permute.xlu0 %22 }
  0x86   :  { %24 = vst [vmem:[#allocation5] sm:$0xff] %v23_v1 }
  0x87   :  { %76 = shalt.err (!%p73_p12)
}
  0x88   :  { %s77_s0 = scalar_lea.hbm %s129_s1, 128 }
  0x89   :  { %p78_p13 = scmp.ne.s32.totalorder %s129_s1, %s77_s0  ;;  %p81_p0 = scmp.lt.u32.totalorder %s77_s0, %s129_s1 }
  0x8b   :  { %p83_p1 = pnand %p81_p0, %p78_p13 }
  0x8d   :  { %86 = shalt.err (!%p83_p1)
}
  0x8e   :  { %34 = dma.vmem_to_hbm [thread:$0]  %s32_s20, 128, %s129_s1, [#allocation4]  }
  0x8f   :  { %89 = dma.done.wait [#allocation4], 128  }
  0x90   :  { %90 = vsyncadd [#allocation4], 4294967168 }
  0x91   :  { %38 = vsyncpa [#allocation3], 1 }
  0x92   :  { %39 = vsyncpa [#allocation4], 1 }

</bundles_post_ra>
